<compile_context>
chip_gen: v7x
topology: tpu7x:2x2x1
jax: 0.10.0
libtpu: 0.0.40
codegen_flags: <defaults>
</compile_context>

<pallas_src>
import functools

import jax
import jax.numpy as jnp
import numpy as np
from jax.experimental import pallas as pl
from jax.experimental.pallas import tpu as pltpu


def _round_up(n, m):
    return ((n + m - 1) // m) * m


def _cdiv(a, b):
    return (a + b - 1) // b


def _vmem_capacity_bytes():
    try:
        cap = int(getattr(pltpu.get_tpu_info(), "vmem_capacity_bytes", 0))
        if cap > 0:
            return cap
    except Exception:
        pass
    return 64 * 2**20  # conservative fallback = v7x per-TensorCore budget


@functools.lru_cache(maxsize=None)
def _buffered_one_supported():
    """Probe (once, outside jit) whether pipeline_mode=pl.Buffered(1) compiles and runs."""
    try:
        def k(x_ref, o_ref):
            o_ref[...] = x_ref[...] + 1.0

        f = pl.pallas_call(
            k,
            out_shape=jax.ShapeDtypeStruct((16, 128), jnp.float32),
            grid=(2,),
            in_specs=[pl.BlockSpec((8, 128), lambda i: (0, 0),
                                   pipeline_mode=pl.Buffered(1))],
            out_specs=pl.BlockSpec((8, 128), lambda i: (i, 0)),
        )
        out = jax.block_until_ready(f(jnp.zeros((8, 128), jnp.float32)))
        return bool(np.allclose(np.asarray(out), 1.0))
    except Exception:
        return False


def _mlp_kernel(x_ref, w1t_ref, b1_ref, w2t_ref, b2_ref, w3t_ref, b3_ref,
                h1_ref, h2_ref, h3_ref, a1_ref, a2_ref,
                *, n_hid, h_p, a_p, compute_dtype):
    """One batch tile: three chained matmuls with ReLU, plus KFRA activation stats."""
    cd = compute_dtype

    def write_act(a_ref, r):
        # a-output tile = [relu(h) | 1.0 at column n_hid | zeros], all lane-dense.
        bp = r.shape[0]
        if a_p == h_p:
            # Ones column lives inside the existing padded lanes (n_hid % 128 != 0).
            col = jax.lax.broadcasted_iota(jnp.int32, (bp, h_p), 1)
            a_ref[...] = jnp.where(col == n_hid, 1.0, r).astype(a_ref.dtype)
        else:
            # n_hid % 128 == 0: extra 128-lane tail block holds the ones column.
            a_ref[:, :h_p] = r.astype(a_ref.dtype)
            col = jax.lax.broadcasted_iota(jnp.int32, (bp, a_p - h_p), 1)
            a_ref[:, h_p:] = jnp.where(col == 0, 1.0, 0.0).astype(a_ref.dtype)

    x = x_ref[...].astype(cd)                       # bf16 operands when weights are bf16
    h1 = jnp.dot(x, w1t_ref[...], preferred_element_type=jnp.float32) + b1_ref[...]
    h1_ref[...] = h1.astype(h1_ref.dtype)
    r1 = jnp.maximum(h1, 0.0)
    write_act(a1_ref, r1)

    h2 = jnp.dot(r1.astype(cd), w2t_ref[...],
                 preferred_element_type=jnp.float32) + b2_ref[...]
    h2_ref[...] = h2.astype(h2_ref.dtype)
    r2 = jnp.maximum(h2, 0.0)
    write_act(a2_ref, r2)

    h3_ref[...] = (jnp.dot(r2.astype(cd), w3t_ref[...],
                           preferred_element_type=jnp.float32)
                   + b3_ref[...]).astype(h3_ref.dtype)


def _jnp_forward(x2d, params, ones):
    """Plain-XLA path for toy shapes (padding to 128 lanes would be pure waste)."""
    w1, b1, w2, b2, w3, b3 = params
    h1 = x2d @ w1.T + b1
    r1 = jnp.maximum(h1, 0.0)
    h2 = r1 @ w2.T + b2
    r2 = jnp.maximum(h2, 0.0)
    h3 = r2 @ w3.T + b3
    a0 = jnp.concatenate([x2d, ones], axis=1)
    a1 = jnp.concatenate([r1, ones], axis=1)
    a2 = jnp.concatenate([r2, ones], axis=1)
    return h3, h1, h2, a0, a1, a2


@functools.partial(
    jax.jit,
    static_argnames=("weight_dtype", "stats_dtype", "force_pallas",
                     "single_buffer_weights"))
def _forward_impl(x, params, *, weight_dtype, stats_dtype, force_pallas,
                  single_buffer_weights):
    w1, b1, w2, b2, w3, b3 = params
    input_dim = w1.shape[1]
    n_hid = w1.shape[0]
    output_dim = w3.shape[0]

    x2d = x.reshape(-1, input_dim).astype(jnp.float32)      # a0 = x.view(-1, D_in)
    bsz = x2d.shape[0]
    ones = jnp.ones((bsz, 1), jnp.float32)

    # ---- toy-shape fallback (all feature dims < 128 -> padding is >95% waste) ----
    if not force_pallas and max(input_dim, n_hid, output_dim) < 128 and bsz <= 1024:
        return _jnp_forward(x2d, params, ones)

    vmem_cap = _vmem_capacity_bytes()

    # ---- lane-dense padding of feature dims (exact: zero weights / zero biases) ----
    din_p = _round_up(input_dim, 128)
    h_p = _round_up(n_hid, 128)
    dout_p = _round_up(output_dim, 128)
    a_p = _round_up(n_hid + 1, 128)          # activation stats incl. ones column

    # ---- resident-weight cliff guard (v7x: 64 MiB VMEM per TensorCore) ----
    wd = jnp.dtype(weight_dtype)
    resident_w_f32 = 4 * (din_p * h_p + h_p * h_p + h_p * dout_p)
    if wd == jnp.dtype(jnp.float32) and resident_w_f32 > int(0.45 * vmem_cap):
        # f32 weights would not stay comfortably resident: downgrade to bf16.
        # TODO(synk): for hidden sizes where even bf16 weights do not fit, tile the
        # hidden dim with an extra grid axis + VMEM accumulator instead.
        wd = jnp.dtype(jnp.bfloat16)
    compute_dtype = wd                        # bf16 weights => bf16 dot operands
    sd = jnp.dtype(stats_dtype)

    # ---- VMEM footprint (resident weights + double-buffered streamed batch tiles) ----
    wbuf = 1 if single_buffer_weights else 2
    resident = wbuf * (wd.itemsize * (din_p * h_p + h_p * h_p + h_p * dout_p)
                       + 4 * (2 * h_p + dout_p))
    per_row = (4 * din_p                                  # x tile (f32)
               + sd.itemsize * (2 * h_p + 2 * a_p)        # h1, h2, a1, a2
               + 4 * dout_p)                              # h3 (f32)

    # ---- batch tiling: minimize padding waste, keep >= 2 grid steps (megacore) ----
    target = 1024 if vmem_cap >= (96 << 20) else 512
    while target > 64 and resident + 2 * target * per_row > int(0.8 * vmem_cap):
        target //= 2
    n_blocks = max(2, _cdiv(bsz, target))
    block_b = _round_up(_cdiv(bsz, n_blocks), 8)
    padded_b = n_blocks * block_b

    xp = jnp.pad(x2d, ((0, padded_b - bsz), (0, din_p - input_dim)))

    # Pre-transpose weights to (in, out); zero-pad; biases as (1, out) rows.
    w1t = jnp.pad(w1.T.astype(wd), ((0, din_p - input_dim), (0, h_p - n_hid)))
    w2t = jnp.pad(w2.T.astype(wd), ((0, h_p - n_hid), (0, h_p - n_hid)))
    w3t = jnp.pad(w3.T.astype(wd), ((0, h_p - n_hid), (0, dout_p - output_dim)))
    b1r = jnp.pad(b1.reshape(1, -1).astype(jnp.float32), ((0, 0), (0, h_p - n_hid)))
    b2r = jnp.pad(b2.reshape(1, -1).astype(jnp.float32), ((0, 0), (0, h_p - n_hid)))
    b3r = jnp.pad(b3.reshape(1, -1).astype(jnp.float32), ((0, 0), (0, dout_p - output_dim)))

    # ---- BlockSpecs: x / outputs stream over the batch grid; weights stay resident ----
    res_kw = dict(pipeline_mode=pl.Buffered(1)) if single_buffer_weights else {}
    x_spec = pl.BlockSpec((block_b, din_p), lambda i: (i, 0))
    w1_spec = pl.BlockSpec((din_p, h_p), lambda i: (0, 0), **res_kw)
    w2_spec = pl.BlockSpec((h_p, h_p), lambda i: (0, 0), **res_kw)
    w3_spec = pl.BlockSpec((h_p, dout_p), lambda i: (0, 0), **res_kw)
    b1_spec = pl.BlockSpec((1, h_p), lambda i: (0, 0), **res_kw)
    b2_spec = pl.BlockSpec((1, h_p), lambda i: (0, 0), **res_kw)
    b3_spec = pl.BlockSpec((1, dout_p), lambda i: (0, 0), **res_kw)

    h1_spec = pl.BlockSpec((block_b, h_p), lambda i: (i, 0))
    h2_spec = pl.BlockSpec((block_b, h_p), lambda i: (i, 0))
    h3_spec = pl.BlockSpec((block_b, dout_p), lambda i: (i, 0))
    a1_spec = pl.BlockSpec((block_b, a_p), lambda i: (i, 0))
    a2_spec = pl.BlockSpec((block_b, a_p), lambda i: (i, 0))

    out_shapes = (
        jax.ShapeDtypeStruct((padded_b, h_p), sd),              # h1
        jax.ShapeDtypeStruct((padded_b, h_p), sd),              # h2
        jax.ShapeDtypeStruct((padded_b, dout_p), jnp.float32),  # h3 (forward output)
        jax.ShapeDtypeStruct((padded_b, a_p), sd),              # a1 = [relu(h1), 1]
        jax.ShapeDtypeStruct((padded_b, a_p), sd),              # a2 = [relu(h2), 1]
    )

    streamed = 2 * block_b * per_row                            # double-buffered streams
    vmem_limit = int(max(int(1.25 * (resident + streamed)), 16 << 20))
    vmem_limit = int(min(vmem_limit, vmem_cap - (4 << 20)))     # stay under physical budget

    kernel = functools.partial(_mlp_kernel, n_hid=n_hid, h_p=h_p, a_p=a_p,
                               compute_dtype=compute_dtype)

    h1p, h2p, h3p, a1p, a2p = pl.pallas_call(
        kernel,
        out_shape=out_shapes,
        grid=(n_blocks,),
        in_specs=[x_spec, w1_spec, b1_spec, w2_spec, b2_spec, w3_spec, b3_spec],
        out_specs=(h1_spec, h2_spec, h3_spec, a1_spec, a2_spec),
        compiler_params=pltpu.CompilerParams(
            dimension_semantics=("parallel",),
            vmem_limit_bytes=vmem_limit),
    )(xp, w1t, b1r, w2t, b2r, w3t, b3r)

    # ---- slice back to logical shapes ----
    h1 = h1p[:bsz, :n_hid]
    h2 = h2p[:bsz, :n_hid]
    h3 = h3p[:bsz, :output_dim]
    a1 = a1p[:bsz, :n_hid + 1]
    a2 = a2p[:bsz, :n_hid + 1]
    a0 = jnp.concatenate([x2d, ones], axis=1)
    return h3, h1, h2, a0, a1, a2


def linear_2l_kfra_forward(x, params, *, weight_dtype=jnp.float32,
                           stats_dtype=jnp.float32, force_pallas=False):
    """Returns (h3, h1, h2, a0, a1, a2) exactly like the PyTorch module
    (h3 is the forward return value, the rest are the stashed attributes)."""
    return _forward_impl(
        x, params,
        weight_dtype=jnp.dtype(weight_dtype),
        stats_dtype=jnp.dtype(stats_dtype),
        force_pallas=force_pallas,
        single_buffer_weights=_buffered_one_supported())


def init_params(key, input_dim, output_dim, n_hid):
    """Deterministic init mimicking nn.Linear default (uniform +-1/sqrt(fan_in))."""
    ks = jax.random.split(key, 6)

    def lin(kw, kb, fan_in, fan_out):
        bound = 1.0 / jnp.sqrt(fan_in)
        w = jax.random.uniform(kw, (fan_out, fan_in), jnp.float32, -bound, bound)
        b = jax.random.uniform(kb, (fan_out,), jnp.float32, -bound, bound)
        return w, b

    w1, b1 = lin(ks[0], ks[1], input_dim, n_hid)
    w2, b2 = lin(ks[2], ks[3], n_hid, n_hid)
    w3, b3 = lin(ks[4], ks[5], n_hid, output_dim)
    return (w1, b1, w2, b2, w3, b3)


def _reference_forward(x, params):
    w1, b1, w2, b2, w3, b3 = params
    bsz = x.shape[0]
    one = jnp.ones((bsz, 1), jnp.float32)
    a0 = x.reshape(bsz, -1)
    h1 = a0 @ w1.T + b1
    a1 = jnp.maximum(h1, 0.0)
    h2 = a1 @ w2.T + b2
    a2 = jnp.maximum(h2, 0.0)
    h3 = a2 @ w3.T + b3
    return (h3, h1, h2,
            jnp.concatenate([a0, one], axis=1),
            jnp.concatenate([a1, one], axis=1),
            jnp.concatenate([a2, one], axis=1))


def _check(outs, refs, atol, rtol):
    for o, r in zip(outs, refs):
        assert o.shape == r.shape, (o.shape, r.shape)
        of = jnp.asarray(o, jnp.float32)
        assert jnp.allclose(of, r, atol=atol, rtol=rtol), float(jnp.max(jnp.abs(of - r)))


if __name__ == "__main__":
    input_dim, output_dim, n_hid = 16, 8, 32
    batch = 8

    key = jax.random.PRNGKey(0)
    kx, kp = jax.random.split(key)
    x = jax.random.normal(kx, (batch, input_dim), jnp.float32)
    params = init_params(kp, input_dim, output_dim, n_hid)
    refs = _reference_forward(x, params)

    # 1) Pallas kernel, f32 path (force past the toy-shape fallback so it runs).
    outs = jax.block_until_ready(linear_2l_kfra_forward(x, params, force_pallas=True))
    _check(outs, refs, atol=1e-5, rtol=1e-5)

    # 2) Pallas kernel, real bf16 MXU path (looser tolerance by construction).
    outs_bf16 = jax.block_until_ready(
        linear_2l_kfra_forward(x, params, weight_dtype=jnp.bfloat16, force_pallas=True))
    _check(outs_bf16, refs, atol=5e-2, rtol=5e-2)

    # 3) Exercise the n_hid % 128 == 0 ones-column path of the kernel.
    params128 = init_params(kp, input_dim, output_dim, 128)
    refs128 = _reference_forward(x, params128)
    outs128 = jax.block_until_ready(
        linear_2l_kfra_forward(x, params128, force_pallas=True))
    _check(outs128, refs128, atol=1e-5, rtol=1e-5)

    # 4) Default call at toy shapes uses the plain-XLA fallback.
    outs_fb = jax.block_until_ready(linear_2l_kfra_forward(x, params))
    _check(outs_fb, refs, atol=1e-5, rtol=1e-5)

    print("KERNEL_OK")
</pallas_src>

<mosaic_0001>
module attributes {stable_mosaic.version = 11 : i64} {
  func.func @k(%arg0: i32, %arg1: memref<8x128xf32, #tpu.memory_space<vmem>>, %arg2: memref<8x128xf32, #tpu.memory_space<vmem>>) attributes {dimension_semantics = [#tpu.dimension_semantics<arbitrary>], iteration_bounds = array<i64: 2>, scalar_prefetch = 0 : i64, scratch_operands = 0 : i64, tpu.core_type = #tpu.core_type<tc>, window_params = [{pipeline_mode = #tpu.pipeline_mode<synchronous>, transform_indices = @transform_0, window_bounds = array<i64: 8, 128>}, {transform_indices = @transform_1, window_bounds = array<i64: 8, 128>}]} {
    %c0 = arith.constant 0 : index
    %c0_0 = arith.constant 0 : index
    %0 = vector.load %arg1[%c0, %c0_0] : memref<8x128xf32, #tpu.memory_space<vmem>>, vector<8x128xf32>
    %cst = arith.constant 1.000000e+00 : f32
    %1 = vector.broadcast %cst : f32 to vector<8x128xf32>
    %2 = arith.addf %0, %1 : vector<8x128xf32>
    %c0_1 = arith.constant 0 : index
    %c0_2 = arith.constant 0 : index
    %3 = vector.load %arg2[%c0_1, %c0_2] : memref<8x128xf32, #tpu.memory_space<vmem>>, vector<8x128xf32>
    tpu.vector_store %arg2[%c0_1, %c0_2], %2 {strides = array<i32>} : memref<8x128xf32, #tpu.memory_space<vmem>>, vector<8x128xf32>,
    return
  }
  func.func @transform_0(%arg0: i32) -> (i32, i32) {
    %c0_i32 = arith.constant 0 : i32
    %c0_i32_0 = arith.constant 0 : i32
    %c0_i32_1 = arith.constant 0 : i32
    return %c0_i32, %c0_i32_0 : i32, i32
  }
  func.func @transform_1(%arg0: i32) -> (i32, i32) {
    %c0_i32 = arith.constant 0 : i32
    %c0_i32_0 = arith.constant 0 : i32
    return %arg0, %c0_i32 : i32, i32
  }
}

module attributes {stable_mosaic.version = 11 : i64} {
  func.func @_mlp_kernel(%arg0: i32, %arg1: memref<8x128xf32, #tpu.memory_space<vmem>>, %arg2: memref<128x128xf32, #tpu.memory_space<vmem>>, %arg3: memref<1x128xf32, #tpu.memory_space<vmem>>, %arg4: memref<128x128xf32, #tpu.memory_space<vmem>>, %arg5: memref<1x128xf32, #tpu.memory_space<vmem>>, %arg6: memref<128x128xf32, #tpu.memory_space<vmem>>, %arg7: memref<1x128xf32, #tpu.memory_space<vmem>>, %arg8: memref<8x128xf32, #tpu.memory_space<vmem>>, %arg9: memref<8x128xf32, #tpu.memory_space<vmem>>, %arg10: memref<8x128xf32, #tpu.memory_space<vmem>>, %arg11: memref<8x128xf32, #tpu.memory_space<vmem>>, %arg12: memref<8x128xf32, #tpu.memory_space<vmem>>) attributes {dimension_semantics = [#tpu.dimension_semantics<parallel>], iteration_bounds = array<i64: 2>, scalar_prefetch = 0 : i64, scratch_operands = 0 : i64, tpu.core_type = #tpu.core_type<tc>, window_params = [{transform_indices = @transform_0, window_bounds = array<i64: 8, 128>}, {pipeline_mode = #tpu.pipeline_mode<synchronous>, transform_indices = @transform_1, window_bounds = array<i64: 128, 128>}, {pipeline_mode = #tpu.pipeline_mode<synchronous>, transform_indices = @transform_2, window_bounds = array<i64: 1, 128>}, {pipeline_mode = #tpu.pipeline_mode<synchronous>, transform_indices = @transform_3, window_bounds = array<i64: 128, 128>}, {pipeline_mode = #tpu.pipeline_mode<synchronous>, transform_indices = @transform_4, window_bounds = array<i64: 1, 128>}, {pipeline_mode = #tpu.pipeline_mode<synchronous>, transform_indices = @transform_5, window_bounds = array<i64: 128, 128>}, {pipeline_mode = #tpu.pipeline_mode<synchronous>, transform_indices = @transform_6, window_bounds = array<i64: 1, 128>}, {transform_indices = @transform_7, window_bounds = array<i64: 8, 128>}, {transform_indices = @transform_8, window_bounds = array<i64: 8, 128>}, {transform_indices = @transform_9, window_bounds = array<i64: 8, 128>}, {transform_indices = @transform_10, window_bounds = array<i64: 8, 128>}, {transform_indices = @transform_11, window_bounds = array<i64: 8, 128>}]} {
    %c0 = arith.constant 0 : index
    %c0_0 = arith.constant 0 : index
    %0 = vector.load %arg1[%c0, %c0_0] : memref<8x128xf32, #tpu.memory_space<vmem>>, vector<8x128xf32>
    %c0_1 = arith.constant 0 : index
    %c0_2 = arith.constant 0 : index
    %1 = vector.load %arg2[%c0_1, %c0_2] : memref<128x128xf32, #tpu.memory_space<vmem>>, vector<128x128xf32>
    %cst = arith.constant dense<0.000000e+00> : vector<8x128xf32>
    %2 = tpu.matmul %0, %1, %cst {dimension_numbers = #tpu.dot_dimension_numbers<[1], [0], [0], [1], [0, 0, 1, 1], [], []>} : vector<8x128xf32>, vector<128x128xf32>, vector<8x128xf32> -> vector<8x128xf32>
    %c0_3 = arith.constant 0 : index
    %c0_4 = arith.constant 0 : index
    %3 = vector.load %arg3[%c0_3, %c0_4] : memref<1x128xf32, #tpu.memory_space<vmem>>, vector<1x128xf32>
    %4 = vector.broadcast %3 : vector<1x128xf32> to vector<8x128xf32>
    %5 = arith.addf %2, %4 : vector<8x128xf32>
    %c0_5 = arith.constant 0 : index
    %c0_6 = arith.constant 0 : index
    %6 = vector.load %arg8[%c0_5, %c0_6] : memref<8x128xf32, #tpu.memory_space<vmem>>, vector<8x128xf32>
    tpu.vector_store %arg8[%c0_5, %c0_6], %5 {strides = array<i32>} : memref<8x128xf32, #tpu.memory_space<vmem>>, vector<8x128xf32>,
    %cst_7 = arith.constant 0.000000e+00 : f32
    %7 = vector.broadcast %cst_7 : f32 to vector<8x128xf32>
    %8 = arith.maximumf %5, %7 : vector<8x128xf32>
    %9 = tpu.iota {dimensions = array<i32: 1>} : vector<8x128xi32>
    %c32_i32 = arith.constant 32 : i32
    %10 = vector.broadcast %c32_i32 : i32 to vector<8x128xi32>
    %11 = arith.cmpi eq, %9, %10 : vector<8x128xi32>
    %cst_8 = arith.constant 1.000000e+00 : f32
    %12 = vector.broadcast %cst_8 : f32 to vector<8x128xf32>
    %13 = arith.select %11, %12, %8 : vector<8x128xi1>, vector<8x128xf32>
    %c0_9 = arith.constant 0 : index
    %c0_10 = arith.constant 0 : index
    %14 = vector.load %arg11[%c0_9, %c0_10] : memref<8x128xf32, #tpu.memory_space<vmem>>, vector<8x128xf32>
    tpu.vector_store %arg11[%c0_9, %c0_10], %13 {strides = array<i32>} : memref<8x128xf32, #tpu.memory_space<vmem>>, vector<8x128xf32>,
    %c0_11 = arith.constant 0 : index
    %c0_12 = arith.constant 0 : index
    %15 = vector.load %arg4[%c0_11, %c0_12] : memref<128x128xf32, #tpu.memory_space<vmem>>, vector<128x128xf32>
    %cst_13 = arith.constant dense<0.000000e+00> : vector<8x128xf32>
    %16 = tpu.matmul %8, %15, %cst_13 {dimension_numbers = #tpu.dot_dimension_numbers<[1], [0], [0], [1], [0, 0, 1, 1], [], []>} : vector<8x128xf32>, vector<128x128xf32>, vector<8x128xf32> -> vector<8x128xf32>
    %c0_14 = arith.constant 0 : index
    %c0_15 = arith.constant 0 : index
    %17 = vector.load %arg5[%c0_14, %c0_15] : memref<1x128xf32, #tpu.memory_space<vmem>>, vector<1x128xf32>
    %18 = vector.broadcast %17 : vector<1x128xf32> to vector<8x128xf32>
    %19 = arith.addf %16, %18 : vector<8x128xf32>
    %c0_16 = arith.constant 0 : index
    %c0_17 = arith.constant 0 : index
    %20 = vector.load %arg9[%c0_16, %c0_17] : memref<8x128xf32, #tpu.memory_space<vmem>>, vector<8x128xf32>
    tpu.vector_store %arg9[%c0_16, %c0_17], %19 {strides = array<i32>} : memref<8x128xf32, #tpu.memory_space<vmem>>, vector<8x128xf32>,
    %cst_18 = arith.constant 0.000000e+00 : f32
    %21 = vector.broadcast %cst_18 : f32 to vector<8x128xf32>
    %22 = arith.maximumf %19, %21 : vector<8x128xf32>
    %23 = tpu.iota {dimensions = array<i32: 1>} : vector<8x128xi32>
    %c32_i32_19 = arith.constant 32 : i32
    %24 = vector.broadcast %c32_i32_19 : i32 to vector<8x128xi32>
    %25 = arith.cmpi eq, %23, %24 : vector<8x128xi32>
    %cst_20 = arith.constant 1.000000e+00 : f32
    %26 = vector.broadcast %cst_20 : f32 to vector<8x128xf32>
    %27 = arith.select %25, %26, %22 : vector<8x128xi1>, vector<8x128xf32>
    %c0_21 = arith.constant 0 : index
    %c0_22 = arith.constant 0 : index
    %28 = vector.load %arg12[%c0_21, %c0_22] : memref<8x128xf32, #tpu.memory_space<vmem>>, vector<8x128xf32>
    tpu.vector_store %arg12[%c0_21, %c0_22], %27 {strides = array<i32>} : memref<8x128xf32, #tpu.memory_space<vmem>>, vector<8x128xf32>,
    %c0_23 = arith.constant 0 : index
    %c0_24 = arith.constant 0 : index
    %29 = vector.load %arg6[%c0_23, %c0_24] : memref<128x128xf32, #tpu.memory_space<vmem>>, vector<128x128xf32>
    %cst_25 = arith.constant dense<0.000000e+00> : vector<8x128xf32>
    %30 = tpu.matmul %22, %29, %cst_25 {dimension_numbers = #tpu.dot_dimension_numbers<[1], [0], [0], [1], [0, 0, 1, 1], [], []>} : vector<8x128xf32>, vector<128x128xf32>, vector<8x128xf32> -> vector<8x128xf32>
    %c0_26 = arith.constant 0 : index
    %c0_27 = arith.constant 0 : index
    %31 = vector.load %arg7[%c0_26, %c0_27] : memref<1x128xf32, #tpu.memory_space<vmem>>, vector<1x128xf32>
    %32 = vector.broadcast %31 : vector<1x128xf32> to vector<8x128xf32>
    %33 = arith.addf %30, %32 : vector<8x128xf32>
    %c0_28 = arith.constant 0 : index
    %c0_29 = arith.constant 0 : index
    %34 = vector.load %arg10[%c0_28, %c0_29] : memref<8x128xf32, #tpu.memory_space<vmem>>, vector<8x128xf32>
    tpu.vector_store %arg10[%c0_28, %c0_29], %33 {strides = array<i32>} : memref<8x128xf32, #tpu.memory_space<vmem>>, vector<8x128xf32>,
    return
  }
  func.func @transform_0(%arg0: i32) -> (i32, i32) {
    %c0_i32 = arith.constant 0 : i32
    %c0_i32_0 = arith.constant 0 : i32
    return %arg0, %c0_i32 : i32, i32
  }
  func.func @transform_1(%arg0: i32) -> (i32, i32) {
    %c0_i32 = arith.constant 0 : i32
    %c0_i32_0 = arith.constant 0 : i32
    %c0_i32_1 = arith.constant 0 : i32
    return %c0_i32, %c0_i32_0 : i32, i32
  }
  func.func @transform_2(%arg0: i32) -> (i32, i32) {
    %c0_i32 = arith.constant 0 : i32
    %c0_i32_0 = arith.constant 0 : i32
    %c0_i32_1 = arith.constant 0 : i32
    return %c0_i32, %c0_i32_0 : i32, i32
  }
  func.func @transform_3(%arg0: i32) -> (i32, i32) {
    %c0_i32 = arith.constant 0 : i32
    %c0_i32_0 = arith.constant 0 : i32
    %c0_i32_1 = arith.constant 0 : i32
    return %c0_i32, %c0_i32_0 : i32, i32
  }
  func.func @transform_4(%arg0: i32) -> (i32, i32) {
    %c0_i32 = arith.constant 0 : i32
    %c0_i32_0 = arith.constant 0 : i32
    %c0_i32_1 = arith.constant 0 : i32
    return %c0_i32, %c0_i32_0 : i32, i32
  }
  func.func @transform_5(%arg0: i32) -> (i32, i32) {
    %c0_i32 = arith.constant 0 : i32
    %c0_i32_0 = arith.constant 0 : i32
    %c0_i32_1 = arith.constant 0 : i32
    return %c0_i32, %c0_i32_0 : i32, i32
  }
  func.func @transform_6(%arg0: i32) -> (i32, i32) {
    %c0_i32 = arith.constant 0 : i32
    %c0_i32_0 = arith.constant 0 : i32
    %c0_i32_1 = arith.constant 0 : i32
    return %c0_i32, %c0_i32_0 : i32, i32
  }
  func.func @transform_7(%arg0: i32) -> (i32, i32) {
    %c0_i32 = arith.constant 0 : i32
    %c0_i32_0 = arith.constant 0 : i32
    return %arg0, %c0_i32 : i32, i32
  }
  func.func @transform_8(%arg0: i32) -> (i32, i32) {
    %c0_i32 = arith.constant 0 : i32
    %c0_i32_0 = arith.constant 0 : i32
    return %arg0, %c0_i32 : i32, i32
  }
  func.func @transform_9(%arg0: i32) -> (i32, i32) {
    %c0_i32 = arith.constant 0 : i32
    %c0_i32_0 = arith.constant 0 : i32
    return %arg0, %c0_i32 : i32, i32
  }
  func.func @transform_10(%arg0: i32) -> (i32, i32) {
    %c0_i32 = arith.constant 0 : i32
    %c0_i32_0 = arith.constant 0 : i32
    return %arg0, %c0_i32 : i32, i32
  }
  func.func @transform_11(%arg0: i32) -> (i32, i32) {
    %c0_i32 = arith.constant 0 : i32
    %c0_i32_0 = arith.constant 0 : i32
    return %arg0, %c0_i32 : i32, i32
  }
}

</mosaic_0001>

<bundles_post_ra>
// kernel: tpu_custom_call.1
= control target key start
LH: loop header
LB: loop body
LE: loop exit
PB: predicated region body
PF: predicated region fallthrough
CT: control target
= control target key end

     0   :  { %6 = vsyncpa [#allocation3], 0  ;;  %s482_s0 = inlined_call_operand.hbm [shape: f32[8,128], index: 0, kind: input, shape index: {}]   ;;  %s483_s1 = inlined_call_operand.hbm [shape: f32[16,128], index: 1, kind: output, shape index: {}]  }
   0x1   :  { %7 = vsyncpa [#allocation4], 0 }
   0x2   :  { %9 = vsyncpa [#allocation4 + $0x1], 0  ;;  %s352_s6 = smov 0   ;;  %s354_s7 = smov 0  }
   0x3   :  { %s356_s8 = smov 0   ;;  %s358_s9 = smov 0  }
   0x4 LB: > { %s373_s10 = sadd.s32 4294967295, %s338_s9   ;;  %s184_s11 = sadd.s32 4294967294, %s338_s9   ;;  %s338_s9 = sphi %s358_s9, %s499_s9   ;;  %s334_s8 = sphi %s356_s8, %s498_s8   ;;  %s330_s7 = sphi %s354_s7, %s497_s7   ;;  %s326_s6 = sphi %s352_s6, %s496_s6  }
   0x5   : > { %s377_s12 = sadd.s32 1, %s338_s9   ;;  %s43_s13 = sadd.s32 1, %s334_s8 }
   0x6   : > { %s40_s14 = ssub.s32 %s338_s9, %s377_s12  ;;  %p53_p0 = scmp.ne.s32.totalorder %s334_s8, %s330_s7 }
   0x7   : > { %p41_p1 = scmp.eq.s32.totalorder %s40_s14, 0  ;;  %p54_p2 = scmp.eq.s32.totalorder %s373_s10, 1 }
   0x8   : > { %p59_p3 = scmp.ne.s32.totalorder %s330_s7, %s326_s6  ;;  %p60_p4 = scmp.eq.s32.totalorder %s184_s11, 1 }
   0x9   : > { %s388_s15 = scalar_select %p41_p1, %s334_s8, %s43_s13  }
   0xa   : > { %p390_p5 = por %p54_p2, %p53_p0  ;;  %p394_p6 = por %p60_p4, %p59_p3 }
   0xb   : > { %p185_p7 = scmp.ge.s32.totalorder %s338_s9, 1  ;;  %p67_p8 = scmp.lt.s32.totalorder %s338_s9, 3 }
   0xc   : > { %s487_s16 = scalar_select %p390_p5, 1, 0 }
   0xd   : > { %s488_s17 = scalar_select %p394_p6, 1, 0 }
   0xe   : > { %p484_p9 = scmp.eq.s32.totalorder %s373_s10, 0  ;;  %p401_p10 = pnand %p185_p7, %p67_p8 }
   0xf   : > { %s340_s19 = smov [#allocation2]   ;;  %s244_s24 = scalar_lea.hbm %s482_s0, 128 }
  0x10   : > { %s489_s18 = scalar_select %p401_p10, 1, 0 }
  0x11   : > { %s80_s20 = sshll.u32 %s340_s19, 4  ;;  %p200_p11 = pneg %p401_p10  ;;  %s81_s20 = int_to_ptr.vmem [resolvable:$true] %s80_s20 }
  0x12   : > { %p245_p13 = scmp.ne.s32.totalorder %s482_s0, %s244_s24  ;;  %p251_p3 = scmp.lt.u32.totalorder %s244_s24, %s482_s0 }
  0x13   : > { %p409_p12 = pnand %p484_p9, %p200_p11 }
  0x15   : > { %p246_p0 = pneg %p409_p12 }
  0x17   : > { %p247_p1 = pnand %p246_p0, %p245_p13 }
  0x19   : > { %p248_p2 = pneg %p247_p1 }
  0x1b   : > { %p253_p4 = pnand %p251_p3, %p248_p2 }
  0x1d   : > { %256 = shalt.err (!%p253_p4)
}
  0x1e   : > { %s257_s29 = scalar_lea.vmem %s81_s20, 128  ;;  %p265_p9 = scmp.lt.s32.totalorder %s81_s20, %s81_s20 }
  0x1f   : > { %p258_p7 = scmp.ne.s32.totalorder %s81_s20, %s257_s29  ;;  %p266_p6 = scmp.lt.s32.totalorder %s257_s29, %s257_s29 }
  0x21   : > { %p260_p8 = pnand %p258_p7, %p246_p0  ;;  %p267_p5 = por %p266_p6, %p265_p9 }
  0x23   : > { %p261_p11 = pneg %p260_p8 }
  0x25   : > { %p268_p10 = pnand %p267_p5, %p261_p11 }
  0x27   : > { %271 = shalt.err (!%p268_p10)
}
  0x28   : > { %203 = dma.hbm_to_vmem [thread:$0]  (!%p409_p12), %s482_s0, 128, %s81_s20, [#allocation3]  }
  0x29   : > { %p491_p13 = scmp.ne.s32.totalorder %s489_s18, 0 }
  0x2a   : > { %p492_p1 = scmp.eq.s32.totalorder (!%p491_p13), %s373_s10, 0 }
  0x2b   : > { %93 = sbr.rel (%p491_p13) target bundleno = 77 (0x4d), region = 24 }
  0x32   : > { %317 = dma.done.wait (%p492_p1), [#allocation3], 128   ;;  %p493_p0 = pmov %p492_p1 }
  0x33   : > { %s105_s3 = sand.u32 1, %s330_s7   ;;  %s191_s13 = sshll.u32 %s373_s10, 7  ;;  %v108_v0 = vld [vmem:[#allocation2] sm:$0xff] }
  0x34   : > { %319 = vsyncadd (%p493_p0), [#allocation3], 4294967168  ;;  %s189_s4 = sshll.u32 %s105_s3, 3  ;;  %v109_v1 = vadd.f32 1.0, %v108_v0  ;;  %s442_s19 = scalar_lea.hbm %s483_s1, %s191_s13 }
  0x35   : > { %s107_s5 = scalar_lea.vmem [#allocation5], %s189_s4  ;;  %s112_s20 = scalar_lea.sflag [#allocation4], %s105_s3 }
  0x36   : > { %s125_s11 = sshll.u32 %s107_s5, 4  ;;  %110 = vst [vmem:[%s107_s5] sm:$0xff] %v109_v1  ;;  %p494_p6 = scmp.ne.s32.totalorder %s487_s16, 0  ;;  %s437_s11 = int_to_ptr.vmem [resolvable:$true] %s125_s11 }
  0x37   : > { %s272_s21 = scalar_lea.vmem %s437_s11, 128  ;;  %s341_s10 = smov [#allocation5]  }
  0x38   : > { %p273_p5 = scmp.ne.s32.totalorder %s437_s11, %s272_s21  ;;  %s276_s22 = sshll.u32 %s341_s10, 4  ;;  %s277_s22 = int_to_ptr.vmem [resolvable:$false] %s276_s22 }
  0x39   : > { %s278_s23 = scalar_lea.vmem %s277_s22, 256  ;;  %p279_p12 = scmp.lt.s32.totalorder %s437_s11, %s277_s22 }
  0x3a   : > { %p274_p9 = pnand %p273_p5, %p494_p6  ;;  %p280_p2 = scmp.lt.s32.totalorder %s278_s23, %s272_s21 }
  0x3c   : > { %p275_p10 = pneg %p274_p9  ;;  %p281_p3 = por %p280_p2, %p279_p12 }
  0x3e   : > { %p282_p4 = pnand %p281_p3, %p275_p10 }
  0x40   : > { %285 = shalt.err (!%p282_p4)
}
  0x41   : > { %s286_s24 = scalar_lea.hbm %s442_s19, 128  ;;  %s290_s27 = scalar_lea.hbm %s483_s1, 256 }
  0x42   : > { %p287_p7 = scmp.ne.s32.totalorder %s442_s19, %s286_s24  ;;  %p291_p13 = scmp.lt.u32.totalorder %s442_s19, %s483_s1 }
  0x43   : > { %p292_p1 = scmp.lt.u32.totalorder %s290_s27, %s286_s24  ;;  %p294_p5 = scmp.lt.u32.totalorder %s286_s24, %s442_s19 }
  0x44   : > { %p288_p8 = pnand %p287_p7, %p494_p6 }
  0x45   : > { %p293_p0 = por %p292_p1, %p291_p13 }
  0x46   : > { %p289_p11 = pneg %p288_p8 }
  0x47   : > { %p295_p9 = por %p294_p5, %p293_p0 }
  0x49   : > { %p296_p10 = pnand %p295_p9, %p289_p11 }
  0x4b   : > { %299 = shalt.err (!%p296_p10)
}
  0x4c   : > { %198 = dma.vmem_to_hbm [thread:$0]  (%p494_p6), %s437_s11, 128, %s442_s19, %s112_s20  }
  0x4d PF: > { %p210_p12 = scmp.ge.s32.totalorder %s338_s9, 2  ;;  %s137_s30 = sand.u32 1, %s326_s6  }
  0x4e   : > { %p495_p2 = scmp.ne.s32.totalorder %s488_s17, 0  ;;  %s138_s2 = scalar_lea.sflag [#allocation4], %s137_s30 }
  0x50   : > { %p205_p3 = pnand %p210_p12, %p495_p2 }
  0x52   : > { %321 = dma.done.wait (!%p205_p3), %s138_s2, 128  }
  0x53   : > { %323 = vsyncadd (!%p205_p3), %s138_s2, 4294967168  ;;  %p12_p4 = scmp.ge.s32.totalorder %s377_s12, 4   ;;  %s496_s6 = smov %s330_s7 }
  0x54   : > { %s497_s7 = smov %s334_s8  ;;  %s498_s8 = smov %s388_s15 }
  0x55   : > { %s499_s9 = smov %s377_s12  ;;  %14 = sbr.rel (!%p12_p4) target bundleno = 4 (0x4), region = 61 }
  0x5c   :  { %143 = vsyncpa [#allocation3], 1 }
  0x5d   :  { %145 = vsyncpa [#allocation3 + $0x1], 1 }
  0x5e   :  { %146 = vsyncpa [#allocation4], 1 }
  0x5f   :  { %148 = vsyncpa [#allocation4 + $0x1], 1 }

// kernel: _forward_impl.1
= control target key start
LH: loop header
LB: loop body
LE: loop exit
PB: predicated region body
PF: predicated region fallthrough
CT: control target
= control target key end

     0   :  { %s1218_s17 = smov 0   ;;  %s1444_s0 = inlined_call_operand.vmem [shape: f32[16,128], index: 0, kind: input, shape index: {}]   ;;  %s1445_s1 = inlined_call_operand.vmem [shape: f32[128,128], index: 1, kind: input, shape index: {}]   ;;  %s1446_s2 = inlined_call_operand.vmem [shape: f32[1,128], index: 2, kind: input, shape index: {}]   ;;  %s1447_s3 = inlined_call_operand.vmem [shape: f32[128,128], index: 3, kind: input, shape index: {}]   ;;  %s1448_s4 = inlined_call_operand.vmem [shape: f32[1,128], index: 4, kind: input, shape index: {}]   ;;  %s1449_s5 = inlined_call_operand.vmem [shape: f32[128,128], index: 5, kind: input, shape index: {}]   ;;  %s1450_s6 = inlined_call_operand.vmem [shape: f32[1,128], index: 6, kind: input, shape index: {}]   ;;  %s1451_s7 = inlined_call_operand.vmem [shape: f32[16,128], index: 7, kind: output, shape index: {0}]   ;;  %s1452_s8 = inlined_call_operand.vmem [shape: f32[16,128], index: 8, kind: output, shape index: {1}]   ;;  %s1453_s9 = inlined_call_operand.vmem [shape: f32[16,128], index: 9, kind: output, shape index: {2}]   ;;  %s1454_s10 = inlined_call_operand.vmem [shape: f32[16,128], index: 10, kind: output, shape index: {3}]   ;;  %s1455_s11 = inlined_call_operand.vmem [shape: f32[16,128], index: 11, kind: output, shape index: {4}]  }
   0x1 LB: > { %s892_s18 = sadd.s32 4294967295, %s1153_s17   ;;  %p896_p0 = scmp.ge.s32.totalorder %s1153_s17, 1  ;;  %s1153_s17 = sphi %s1218_s17, %s22_s17  }
   0x2   : > { %p345_p1 = scmp.lt.s32.totalorder %s1153_s17, 3 }
   0x4   : > { %p346_p2 = pnand %p896_p0, %p345_p1 }
   0x5   : > { %v424_v0 = vld [vmem:[%s1445_s1] sm:$0xff] (!%p346_p2)  ;;  %v425_v1 = vld [vmem:[%s1445_s1 + $0x8] sm:$0xff] (!%p346_p2)  ;;  %v426_v2 = vld [vmem:[%s1445_s1 + $0x10] sm:$0xff] (!%p346_p2)  ;;  %v1155_v3 = vmov (!%p346_p2), 0.0|0.0   ;;  %vm1156_vm0 = vmmov (!%p346_p2), 0   ;;  %v1157_v6 = vmov (!%p346_p2), 0.0  }
   0x6   : > { %349 = sbr.rel (%p346_p2) target bundleno = 686 (0x2ae), region = 48  ;;  %1064 = vmatprep.subr.bf16.mxu0 (!%p346_p2), %v1155_v3  ;;  %v1065_v4 = vpack.c.bf16 (!%p346_p2), %v425_v1, %v424_v0  ;;  %v427_v5 = vld [vmem:[%s1445_s1 + $0x18] sm:$0xff] (!%p346_p2)  ;;  %991 = vmatprep.mubr.msk.f32.mxu0 (!%p346_p2), %vm1156_vm0, %v1157_v6  ;;  %v428_v8 = vld [vmem:[%s1445_s1 + $0x20] sm:$0xff] (!%p346_p2)  ;;  %v429_v9 = vld [vmem:[%s1445_s1 + $0x28] sm:$0xff] (!%p346_p2)  ;;  %p399_p3 = scmp.lt.s32.totalorder (!%p346_p2), %s892_s18, 1 }
   0x7   : > { %1088 = vmatprep.subr.bf16.mxu1 (!%p346_p2), %v1155_v3  ;;  %1026 = vmatprep.mubr.msk.f32.mxu1 (!%p346_p2), %vm1156_vm0, %v1157_v6  ;;  %v1068_v7 = vpack.c.bf16 (!%p346_p2), %v427_v5, %v426_v2  ;;  %v524_v10 = vld [vmem:[%s1447_s3] sm:$0xff] (!%p346_p2)  ;;  %v525_v11 = vld [vmem:[%s1447_s3 + $0x8] sm:$0xff] (!%p346_p2)  ;;  %v526_v13 = vld [vmem:[%s1447_s3 + $0x10] sm:$0xff] (!%p346_p2)  ;;  %v1071_v15 = vpack.c.bf16 (!%p346_p2), %v429_v9, %v428_v8  ;;  %v519_v9 = vlaneseq (!%p346_p2) }
   0x8   : > { %1066 = vmatpush3.bf16.msra.mxu0 (!%p346_p2), %v1065_v4  ;;  %v1089_v12 = vpack.c.bf16 (!%p346_p2), %v525_v11, %v524_v10  ;;  %v527_v14 = vld [vmem:[%s1447_s3 + $0x18] sm:$0xff] (!%p346_p2)  ;;  %v430_v16 = vld [vmem:[%s1445_s1 + $0x30] sm:$0xff] (!%p346_p2)  ;;  %v528_v19 = vld [vmem:[%s1447_s3 + $0x20] sm:$0xff] (!%p346_p2) }
   0x9   : > { %1067 = vmatprep.subr.bf16.mxu0 (!%p346_p2), %v1155_v3  ;;  %v431_v17 = vld [vmem:[%s1445_s1 + $0x38] sm:$0xff] (!%p346_p2)  ;;  %v1092_v18 = vpack.c.bf16 (!%p346_p2), %v527_v14, %v526_v13  ;;  %v529_v20 = vld [vmem:[%s1447_s3 + $0x28] sm:$0xff] (!%p346_p2)  ;;  %v432_v22 = vld [vmem:[%s1445_s1 + $0x40] sm:$0xff] (!%p346_p2)  ;;  %v520_v11 = vand.u32 (!%p346_p2), 127, %v519_v9 }
   0xa   : > { %1090 = vmatpush3.bf16.msra.mxu1 (!%p346_p2), %v1089_v12  ;;  %v1074_v21 = vpack.c.bf16 (!%p346_p2), %v431_v17, %v430_v16  ;;  %v433_v23 = vld [vmem:[%s1445_s1 + $0x48] sm:$0xff] (!%p346_p2)  ;;  %v1095_v24 = vpack.c.bf16 (!%p346_p2), %v529_v20, %v528_v19  ;;  %v530_v25 = vld [vmem:[%s1447_s3 + $0x30] sm:$0xff] (!%p346_p2)  ;;  %v531_v26 = vld [vmem:[%s1447_s3 + $0x38] sm:$0xff] (!%p346_p2) }
   0xb   : > { %1091 = vmatprep.subr.bf16.mxu1 (!%p346_p2), %v1155_v3  ;;  %v1077_v27 = vpack.c.bf16 (!%p346_p2), %v433_v23, %v432_v22  ;;  %v434_v28 = vld [vmem:[%s1445_s1 + $0x50] sm:$0xff] (!%p346_p2)  ;;  %v435_v29 = vld [vmem:[%s1445_s1 + $0x58] sm:$0xff] (!%p346_p2)  ;;  %v1098_v30 = vpack.c.bf16 (!%p346_p2), %v531_v26, %v530_v25  ;;  %v532_v31 = vld [vmem:[%s1447_s3 + $0x40] sm:$0xff] (!%p346_p2)  ;;  %vm521_vm1 = vcmp.eq.s32.totalorder (!%p346_p2), %v520_v11, 32 }
   0xc   : > { %1069 = vmatpush3.bf16.msra.mxu0 (!%p346_p2), %v1068_v7  ;;  %v533_v32 = vld [vmem:[%s1447_s3 + $0x48] sm:$0xff] (!%p346_p2)  ;;  %v1080_v33 = vpack.c.bf16 (!%p346_p2), %v435_v29, %v434_v28  ;;  %v436_v34 = vld [vmem:[%s1445_s1 + $0x60] sm:$0xff] (!%p346_p2)  ;;  %v534_v37 = vld [vmem:[%s1447_s3 + $0x50] sm:$0xff] (!%p346_p2) }
   0xd   : > { %1070 = vmatprep.subr.bf16.mxu0 %v1155_v3  ;;  %v437_v35 = vld [vmem:[%s1445_s1 + $0x68] sm:$0xff]  ;;  %v1101_v36 = vpack.c.bf16 %v533_v32, %v532_v31  ;;  %s1457_s18 = smov (!%p399_p3, %s892_s18), 1  ;;  %v535_v38 = vld [vmem:[%s1447_s3 + $0x58] sm:$0xff]  ;;  %v438_v40 = vld [vmem:[%s1445_s1 + $0x70] sm:$0xff] }
   0xe   : > { %1093 = vmatpush3.bf16.msra.mxu1 %v1092_v18  ;;  %v1083_v39 = vpack.c.bf16 %v437_v35, %v436_v34  ;;  %v439_v41 = vld [vmem:[%s1445_s1 + $0x78] sm:$0xff]  ;;  %v1104_v42 = vpack.c.bf16 %v535_v38, %v534_v37  ;;  %s1330_s24 = sshll.u32 %s1457_s18, 3  ;;  %v536_v43 = vld [vmem:[%s1447_s3 + $0x60] sm:$0xff]  ;;  %v537_v44 = vld [vmem:[%s1447_s3 + $0x68] sm:$0xff] }
   0xf   : > { %1094 = vmatprep.subr.bf16.mxu1 %v1155_v3  ;;  %v1086_v45 = vpack.c.bf16 %v439_v41, %v438_v40  ;;  %s402_s18 = scalar_lea.vmem %s1444_s0, %s1330_s24  ;;  %v1107_v46 = vpack.c.bf16 %v537_v44, %v536_v43  ;;  %v538_v48 = vld [vmem:[%s1447_s3 + $0x70] sm:$0xff]  ;;  %v539_v49 = vld [vmem:[%s1447_s3 + $0x78] sm:$0xff]  ;;  %v621_v51 = vld [vmem:[%s1449_s5] sm:$0xff]  ;;  %s406_s14 = scalar_lea.vmem %s1451_s7, %s1330_s24 }
  0x10   : > { %1072 = vmatpush3.bf16.msra.mxu0 %v1071_v15  ;;  %v423_v47 = vld [vmem:[%s402_s18] sm:$0xff]  ;;  %v1110_v50 = vpack.c.bf16 %v539_v49, %v538_v48  ;;  %v622_v52 = vld [vmem:[%s1449_s5 + $0x8] sm:$0xff]  ;;  %v623_v53 = vld [vmem:[%s1449_s5 + $0x10] sm:$0xff]  ;;  %s418_s19 = scalar_lea.vmem %s1454_s10, %s1330_s24  ;;  %s410_s29 = scalar_lea.vmem %s1452_s8, %s1330_s24 }
  0x11   : > { %1073 = vmatprep.subr.bf16.mxu0 %v1155_v3  ;;  %v1113_v54 = vpack.c.bf16 %v622_v52, %v621_v51  ;;  %v624_v55 = vld [vmem:[%s1449_s5 + $0x18] sm:$0xff]  ;;  %v625_v57 = vld [vmem:[%s1449_s5 + $0x20] sm:$0xff]  ;;  %v626_v58 = vld [vmem:[%s1449_s5 + $0x28] sm:$0xff]  ;;  %s422_s12 = scalar_lea.vmem %s1455_s11, %s1330_s24 }
  0x12   : > { %1096 = vmatpush3.bf16.msra.mxu1 %v1095_v24  ;;  %v1116_v56 = vpack.c.bf16 %v624_v55, %v623_v53  ;;  %v1119_v59 = vpack.c.bf16 %v626_v58, %v625_v57  ;;  %v627_v60 = vld [vmem:[%s1449_s5 + $0x30] sm:$0xff]  ;;  %v628_v61 = vld [vmem:[%s1449_s5 + $0x38] sm:$0xff]  ;;  %v629_v63 = vld [vmem:[%s1449_s5 + $0x40] sm:$0xff] }
  0x13   : > { %1097 = vmatprep.subr.bf16.mxu1 %v1155_v3  ;;  %v1122_v62 = vpack.c.bf16 %v628_v61, %v627_v60  ;;  %v630_v0 = vld [vmem:[%s1449_s5 + $0x48] sm:$0xff]  ;;  %v631_v2 = vld [vmem:[%s1449_s5 + $0x50] sm:$0xff]  ;;  %v632_v4 = vld [vmem:[%s1449_s5 + $0x58] sm:$0xff] }
  0x14   : > { %1075 = vmatpush3.bf16.msra.mxu0 %v1074_v21  ;;  %v1125_v1 = vpack.c.bf16 %v630_v0, %v629_v63  ;;  %v1128_v5 = vpack.c.bf16 %v632_v4, %v631_v2  ;;  %v634_v7 = vld [vmem:[%s1449_s5 + $0x68] sm:$0xff]  ;;  %v903_v10 = vld [vmem:[%s1446_s2] ss:$0 sm:$0xff]  ;;  %v635_v16 = vld [vmem:[%s1449_s5 + $0x70] sm:$0xff] }
  0x15   : > { %1076 = vmatprep.subr.bf16.mxu0 %v1155_v3  ;;  %v636_v17 = vld [vmem:[%s1449_s5 + $0x78] sm:$0xff]  ;;  %v904_v19 = vld [vmem:[%s1448_s4] ss:$0 sm:$0xff] }
  0x16   : > { %1099 = vmatpush3.bf16.msra.mxu1 %v1098_v30  ;;  %v1134_v18 = vpack.c.bf16 %v636_v17, %v635_v16  ;;  %v905_v25 = vld [vmem:[%s1450_s6] ss:$0 sm:$0xff] }
  0x17   : > { %1100 = vmatprep.subr.bf16.mxu1 %v1155_v3 }
  0x18   : > { %1078 = vmatpush3.bf16.msra.mxu0 %v1077_v27 }
  0x19   : > { %1079 = vmatprep.subr.bf16.mxu0 %v1155_v3 }
  0x1a   : > { %1102 = vmatpush3.bf16.msra.mxu1 %v1101_v36 }
  0x1b   : > { %1103 = vmatprep.subr.bf16.mxu1 %v1155_v3 }
  0x1c   : > { %1081 = vmatpush3.bf16.msra.mxu0 %v1080_v33 }
  0x1d   : > { %1082 = vmatprep.subr.bf16.mxu0 %v1155_v3 }
  0x1e   : > { %1105 = vmatpush3.bf16.msra.mxu1 %v1104_v42 }
  0x1f   : > { %1106 = vmatprep.subr.bf16.mxu1 %v1155_v3 }
  0x20   : > { %1084 = vmatpush3.bf16.msra.mxu0 %v1083_v39 }
  0x21   : > { %1085 = vmatprep.subr.bf16.mxu0 %v1155_v3 }
  0x22   : > { %1108 = vmatpush3.bf16.msra.mxu1 %v1107_v46 }
  0x23   : > { %1109 = vmatprep.subr.bf16.mxu1 %v1155_v3 }
  0x24   : > { %1087 = vmatpush3.bf16.msra.mxu0 %v1086_v45 }
  0x25   : > { %1112 = vmatprep.subr.bf16.mxu0 %v1155_v3 }
  0x26   : > { %1111 = vmatpush3.bf16.msra.mxu1 %v1110_v50 }
  0x27   : > { %992 = vmatmul.mubr.f32.vlgmr.msra.gmra.mrb[0].mxu0 %v423_v47 }
  0x28   : > { %1061 = vmatprep.mubr.msk.f32.mxu0 %vm1156_vm0, %v1157_v6  ;;  %1114 = vmatpush3.bf16.msra.mxu0 %v1113_v54  ;;  %v633_v6 = vld [vmem:[%s1449_s5 + $0x60] sm:$0xff] }
  0x29   : > { %1115 = vmatprep.subr.bf16.mxu0 %v1155_v3  ;;  %v1131_v8 = vpack.c.bf16 %v634_v7, %v633_v6 }
  0x2c   : > { %1117 = vmatpush3.bf16.msra.mxu0 %v1116_v56 }
  0x2d   : > { %1118 = vmatprep.subr.bf16.mxu0 %v1155_v3 }
  0x30   : > { %1120 = vmatpush3.bf16.msra.mxu0 %v1119_v59 }
  0x31   : > { %1121 = vmatprep.subr.bf16.mxu0 %v1155_v3 }
  0x34   : > { %1123 = vmatpush3.bf16.msra.mxu0 %v1122_v62 }
  0x35   : > { %1124 = vmatprep.subr.bf16.mxu0 %v1155_v3 }
  0x38   : > { %1126 = vmatpush3.bf16.msra.mxu0 %v1125_v1 }
  0x39   : > { %1127 = vmatprep.subr.bf16.mxu0 %v1155_v3 }
  0x3c   : > { %1129 = vmatpush3.bf16.msra.mxu0 %v1128_v5 }
  0x3d   : > { %1130 = vmatprep.subr.bf16.mxu0 %v1155_v3 }
  0x40   : > { %1132 = vmatpush3.bf16.msra.mxu0 %v1131_v8 }
  0x41   : > { %1133 = vmatprep.subr.bf16.mxu0 %v1155_v3 }
  0x44   : > { %1135 = vmatpush3.bf16.msra.mxu0 %v1134_v18 }
  0xfa   : > { %v513_v12 = vpop.f32.mrb[0].mxu0 }
  0xfb   : > { %v514_v13 = vadd.f32 %v903_v10, %v513_v12  ;;  %v993_v14 = vpop.f32.mrb[1].mxu0 }
  0xfd   : > { %517 = vst [vmem:[%s406_s14] sm:$0xff] %v514_v13  ;;  %v518_v3 = vmax.f32 %v514_v13, 0.0 }
  0xff   : > { %v522_v15 = vsel %vm521_vm1, 1.0, %v518_v3  ;;  %1027 = vmatmul.mubr.f32.vlgmr.msra.gmra.mrb[0].mxu1 %v518_v3 }
 0x100   : > { %523 = vst [vmem:[%s418_s19] sm:$0xff] %v522_v15  ;;  %s414_s19 = scalar_lea.vmem %s1453_s9, %s1330_s24 }
 0x1d2   : > { %v613_v20 = vpop.f32.mrb[0].mxu1 }
 0x1d3   : > { %v614_v21 = vadd.f32 %v904_v19, %v613_v20  ;;  %v1028_v22 = vpop.f32.mrb[1].mxu1 }
 0x1d5   : > { %617 = vst [vmem:[%s410_s29] sm:$0xff] %v614_v21  ;;  %v618_v23 = vmax.f32 %v614_v21, 0.0 }
 0x1d7   : > { %v619_v24 = vsel %vm521_vm1, 1.0, %v618_v23  ;;  %1062 = vmatmul.mubr.f32.vlgmr.msra.gmra.mrb[2].mxu0 %v618_v23 }
 0x1d8   : > { %620 = vst [vmem:[%s422_s12] sm:$0xff] %v619_v24 }
 0x2aa   : > { %v710_v26 = vpop.f32.mrb[2].mxu0 }
 0x2ab   : > { %v711_v27 = vadd.f32 %v905_v25, %v710_v26  ;;  %v1063_v28 = vpop.f32.mrb[3].mxu0 }
 0x2ad   : > { %714 = vst [vmem:[%s414_s19] sm:$0xff] %v711_v27 }
 0x2ae PF: > { %s22_s17 = sadd.s32 1, %s1153_s17  }
 0x2af   : > { %p19_p4 = scmp.ge.s32.totalorder %s22_s17, 4  }
 0x2b1   :  { %21 = sbr.rel (!%p19_p4) target bundleno = 1 (0x1), region = 126 }

</bundles_post_ra>
